<compile_context>
chip_gen: v5e
topology: v5e:2x2
jax: 0.10.0
libtpu: 0.0.40
codegen_flags: <defaults>
</compile_context>

<pallas_src>
import math

import jax
import jax.numpy as jnp
import numpy as np
from jax import lax
from jax.experimental import pallas as pl
from jax.experimental.pallas import tpu as pltpu

# --- small, module-consistent dimensions -------------------------------------
B, N, D = 2, 8, 32              # batch, seq_len, dim
BN = B * N                      # fused batch*seq rows
DQK = 64                        # query_key_dim
H = int(2.0 * D)                # hidden_dim = expansion_factor * dim
PROJ = 2 * H + DQK              # fused projection width (to_hidden | to_qk)
ROT = min(32, DQK)              # RotaryEmbedding(dim=min(32, query_key_dim))
LN_EPS = 1e-5
REL_NUM_BUCKETS = 32
REL_MAX_DIST = 128
REL_SCALE = DQK ** 0.5
NEG_BIG = -1e9                  # finite "mask" value folded into the bias

# --- packed fp32 parameter slab: lane width 128, row offsets ------------------
LANES = 128
# rows 0..7 : row0 ln_g[0:32], row1 ln_b[0:32], row2 b_out[0:32],
#             row3 [b_v | b_gate] (128), row4 b_qk (64), rows 5..7 zero pad
R_A = 8                          # [Aq | Ak]   rope/offset-scale fold  (BN, 128)
R_B = R_A + BN                   # [Bq | Bk]                           (BN, 128)
R_C = R_B + BN                   # [Cq | Ck]                           (BN, 128)
R_D = R_C + BN                   # [Dq | Dk]  (rope of beta)           (BN, 128)
R_BIAS = R_D + BN                # bias/N + folded batch/my_mask2 mask (BN, BN)
TAB_ROWS = R_BIAS + BN           # = 88

S1 = DQK - ROT // 2              # rope roll shifts (half-split layout)
S2 = ROT // 2


# =============================== Pallas kernel ===============================
def gau_kernel(x_ref, w_ref, tab_ref, o_ref):
    x = x_ref[...]                                        # (BN, D) fp32

    # --- static slices into the packed parameter slab ---
    ln_g = tab_ref[0:1, 0:D]
    ln_b = tab_ref[1:2, 0:D]
    b_out = tab_ref[2:3, 0:D]
    b_vg = tab_ref[3:4, 0:2 * H]                          # (1, 128)
    b_qk = tab_ref[4:5, 0:DQK]                            # (1, 64)
    tab_a = tab_ref[R_A:R_A + BN, :]                      # (BN, 128)
    tab_b = tab_ref[R_B:R_B + BN, :]
    tab_c = tab_ref[R_C:R_C + BN, :]
    tab_d = tab_ref[R_D:R_D + BN, :]
    bias = tab_ref[R_BIAS:R_BIAS + BN, 0:BN]              # (BN, BN)

    # --- LayerNorm(dim) ---
    mu = jnp.mean(x, axis=-1, keepdims=True)
    xc = x - mu
    var = jnp.mean(xc * xc, axis=-1, keepdims=True)
    nx = xc * lax.rsqrt(var + LN_EPS) * ln_g + ln_b

    # --- token shift: F.pad(x_shift, (0,0,1,-1)) on the first D//2 channels.
    # Masks are generated in-kernel (iota + compare); rows with row % N == 0
    # are zeroed so the circular roll never leaks across the batch boundary.
    row = lax.broadcasted_iota(jnp.int32, (BN, D), 0)
    col = lax.broadcasted_iota(jnp.int32, (BN, D), 1)
    shifted = pltpu.roll(nx, 1, axis=0)
    shifted = jnp.where(row % N == 0, 0.0, shifted)
    nx2 = jnp.where(col < D // 2, shifted, nx)

    # --- fused projection [to_hidden | to_qk] (one MXU push), per-chunk bias
    # add + SiLU (keeps every elementwise slice <= 128 lanes wide) ---
    hvq = jnp.dot(nx2.astype(jnp.bfloat16), w_ref[0:D, :],
                  preferred_element_type=jnp.float32)     # (BN, PROJ)
    vg = hvq[:, 0:2 * H] + b_vg
    vg = vg * jax.nn.sigmoid(vg)                          # SiLU
    v, gate = vg[:, 0:H], vg[:, H:2 * H]
    qk = hvq[:, 2 * H:PROJ] + b_qk
    qk = qk * jax.nn.sigmoid(qk)                          # SiLU

    # --- OffsetScale (heads=2) + rotary, folded into 4 tables; the two lane
    # rolls are computed once on the shared qk and reused by both heads.  The
    # q-head tables carry the folded 1/seq_len. ---
    r1 = pltpu.roll(qk, S1, axis=1)
    r2 = pltpu.roll(qk, S2, axis=1)
    q = (qk * tab_a[:, 0:DQK] + r1 * tab_b[:, 0:DQK]
         + r2 * tab_c[:, 0:DQK] + tab_d[:, 0:DQK])
    k = (qk * tab_a[:, DQK:2 * DQK] + r1 * tab_b[:, DQK:2 * DQK]
         + r2 * tab_c[:, DQK:2 * DQK] + tab_d[:, DQK:2 * DQK])

    # --- attention: relu(q k^T / N + relb / N)^2; the block-diagonal batch
    # mask (and my_mask2 zeros) are folded into `bias` as -1e9 -> relu gives
    # exact zeros, so no separate mask multiply is needed. ---
    sim = lax.dot_general(q.astype(jnp.bfloat16), k.astype(jnp.bfloat16),
                          (((1,), (1,)), ((), ())),
                          preferred_element_type=jnp.float32)   # (BN, BN)
    attn = jnp.maximum(sim + bias, 0.0)
    attn = attn * attn

    # --- out = (attn @ v) * gate -> Linear(H, D) -> + residual ---
    out = jnp.dot(attn.astype(jnp.bfloat16), v.astype(jnp.bfloat16),
                  preferred_element_type=jnp.float32)           # (BN, H)
    out = out * gate
    out = jnp.dot(out.astype(jnp.bfloat16), w_ref[D:D + H, 0:D],
                  preferred_element_type=jnp.float32) + b_out
    o_ref[...] = out + x


# ============================== JAX glue / wrapper ===========================
def gau_pallas(x, w_all, tab):
    x2d = x.reshape(BN, D)
    # Single tile, no grid: un-pipelined whole-array VMEM operands (no
    # double-buffering / pipeline bookkeeping for a 1-step problem).
    # TODO(synk): for many independent instances or stacked layers, add an
    # instance axis as the grid (weights' index_map constant along it) and mark
    # it "parallel" so v7x can use both TensorCores.
    out = pl.pallas_call(
        gau_kernel,
        out_shape=jax.ShapeDtypeStruct((BN, D), jnp.float32),
        in_specs=[
            pl.BlockSpec(memory_space=pltpu.MemorySpace.VMEM),
            pl.BlockSpec(memory_space=pltpu.MemorySpace.VMEM),
            pl.BlockSpec(memory_space=pltpu.MemorySpace.VMEM),
        ],
        out_specs=pl.BlockSpec(memory_space=pltpu.MemorySpace.VMEM),
    )(x2d, w_all, tab)
    return out.reshape(B, N, D)


def t5_relative_position_bias(n, emb, scale, num_buckets=REL_NUM_BUCKETS,
                              max_distance=REL_MAX_DIST):
    # causal=False branch of T5RelativePositionBias (computed in plain JAX glue).
    q_pos = jnp.arange(n)
    k_pos = jnp.arange(n)
    rel = k_pos[None, :] - q_pos[:, None]
    npos = -rel
    nb = num_buckets // 2
    ret = (npos < 0).astype(jnp.int32) * nb
    npos = jnp.abs(npos)
    max_exact = nb // 2
    is_small = npos < max_exact
    val_if_large = max_exact + (
        jnp.log(jnp.maximum(npos, 1).astype(jnp.float32) / max_exact)
        / math.log(max_distance / max_exact) * (nb - max_exact)).astype(jnp.int32)
    val_if_large = jnp.minimum(val_if_large, nb - 1)
    ret = ret + jnp.where(is_small, npos, val_if_large)
    return emb[ret, 0] * scale


def make_raw_params(key):
    ks = jax.random.split(key, 8)
    ln_g = jnp.ones((1, D), jnp.float32)
    ln_b = jnp.zeros((1, D), jnp.float32)
    w_h = jax.random.normal(ks[0], (D, 2 * H), jnp.float32) / math.sqrt(D)
    b_h = jax.random.normal(ks[1], (1, 2 * H), jnp.float32) * 0.02
    w_qk = jax.random.normal(ks[2], (D, DQK), jnp.float32) / math.sqrt(D)
    b_qk = jax.random.normal(ks[3], (1, DQK), jnp.float32) * 0.02
    gamma = jax.random.normal(ks[4], (2, DQK), jnp.float32) * 0.02   # OffsetScale init
    beta = jnp.zeros((2, DQK), jnp.float32)
    w_o = jax.random.normal(ks[5], (H, D), jnp.float32) / math.sqrt(H)
    b_o = jax.random.normal(ks[6], (1, D), jnp.float32) * 0.02
    rel_emb = jax.random.normal(ks[7], (REL_NUM_BUCKETS, 1), jnp.float32) * 0.02
    return ln_g, ln_b, w_h, b_h, w_qk, b_qk, gamma, beta, w_o, b_o, rel_emb


def prepare_kernel_params(raw, mask2):
    ln_g, ln_b, w_h, b_h, w_qk, b_qk, gamma, beta, w_o, b_o, rel_emb = raw

    # interleaved -> half-split feature permutation on the first ROT qk features
    # (rotary_embedding_torch uses the interleaved pair convention; since q/k
    # are only contracted against each other, permuting both is exact).
    pair = jnp.arange(ROT // 2)
    perm = jnp.concatenate([2 * pair, 2 * pair + 1, jnp.arange(ROT, DQK)])
    w_qk_p, b_qk_p = w_qk[:, perm], b_qk[:, perm]
    gam_p, bet_p = gamma[:, perm], beta[:, perm]

    # merged bf16 weight blob: rows 0:D = [to_hidden | to_qk], rows D:D+H,
    # cols 0:D = to_out  (one DMA for all matmul weights)
    w_fused = jnp.concatenate([w_h, w_qk_p], axis=1)                    # (D, PROJ)
    w_all = jnp.zeros((D + H, PROJ), jnp.float32)
    w_all = w_all.at[0:D, :].set(w_fused)
    w_all = w_all.at[D:D + H, 0:D].set(w_o)
    w_all = w_all.astype(jnp.bfloat16)

    # rotary tables in half-split order, pre-split into cos / -sin_lo / sin_hi
    inv_freq = 1.0 / (10000.0 ** (jnp.arange(0, ROT, 2, dtype=jnp.float32) / ROT))
    t = jnp.arange(N, dtype=jnp.float32)
    freqs = t[:, None] * inv_freq[None, :]                              # (N, ROT//2)
    cos_h, sin_h = jnp.cos(freqs), jnp.sin(freqs)
    z_half = jnp.zeros((N, ROT // 2), jnp.float32)
    z_tail = jnp.zeros((N, DQK - ROT), jnp.float32)
    cos_e = jnp.concatenate([cos_h, cos_h, jnp.ones((N, DQK - ROT))], axis=-1)
    nsl_e = jnp.concatenate([-sin_h, z_half, z_tail], axis=-1)
    shi_e = jnp.concatenate([z_half, sin_h, z_tail], axis=-1)

    # Fold OffsetScale + rotary into per-head tables so the kernel can share
    # the two lane rolls between q and k:
    #   rope(qk*g + b) = qk*(cos*g) + roll(qk,S1)*(nsl*roll(g,S1))
    #                  + roll(qk,S2)*(shi*roll(g,S2)) + rope(b)
    def fold_head(gam, bet):
        a = cos_e * gam
        bb = nsl_e * jnp.roll(gam, S1, axis=-1)
        cc = shi_e * jnp.roll(gam, S2, axis=-1)
        dd = (cos_e * bet + nsl_e * jnp.roll(bet, S1, axis=-1)
              + shi_e * jnp.roll(bet, S2, axis=-1))
        return a, bb, cc, dd

    # q head carries the folded 1/seq_len
    aq, bq, cq, dq = fold_head(gam_p[0:1] / N, bet_p[0:1] / N)
    ak, bk, ck, dk = fold_head(gam_p[1:2], bet_p[1:2])

    def batch_tile(a):                                                  # (N,DQK)->(BN,DQK)
        return jnp.tile(a, (B, 1))

    tab_a = jnp.concatenate([batch_tile(aq), batch_tile(ak)], axis=1)   # (BN, 128)
    tab_b = jnp.concatenate([batch_tile(bq), batch_tile(bk)], axis=1)
    tab_c = jnp.concatenate([batch_tile(cq), batch_tile(ck)], axis=1)
    tab_d = jnp.concatenate([batch_tile(dq), batch_tile(dk)], axis=1)

    # rel-pos bias / N with the block-diagonal batch mask and my_mask2 zeros
    # folded in as a finite -1e9 (relu -> exact 0, no inf*0 NaN risk).
    # TODO(synk): this additive fold is only exact for binary my_mask2 values.
    relb = t5_relative_position_bias(N, rel_emb, REL_SCALE) / N          # (N, N)
    diag_bias = jnp.where(mask2 > 0, relb, NEG_BIG)
    blockdiag = jnp.kron(jnp.eye(B, dtype=jnp.float32), jnp.ones((N, N), jnp.float32))
    bias_tab = jnp.where(blockdiag > 0, jnp.tile(diag_bias, (B, B)), NEG_BIG)

    # pack every small param / table into one 128-lane fp32 slab (one DMA,
    # no 192->256 lane padding, all big tables are full-lane rows)
    head = jnp.zeros((8, LANES), jnp.float32)
    head = head.at[0, 0:D].set(ln_g[0])
    head = head.at[1, 0:D].set(ln_b[0])
    head = head.at[2, 0:D].set(b_o[0])
    head = head.at[3, 0:2 * H].set(b_h[0])
    head = head.at[4, 0:DQK].set(b_qk_p[0])

    def pad_lanes(a):
        a = jnp.asarray(a, jnp.float32)
        return jnp.pad(a, ((0, 0), (0, LANES - a.shape[1])))

    tab = jnp.concatenate([head, tab_a, tab_b, tab_c, tab_d, pad_lanes(bias_tab)],
                          axis=0)
    assert tab.shape == (TAB_ROWS, LANES), tab.shape
    return w_all, tab


# ---------------- pure-JAX reference (interleaved rotary) for sanity ----------
def ref_gau(x, raw, mask2):
    ln_g, ln_b, w_h, b_h, w_qk, b_qk, gamma, beta, w_o, b_o, rel_emb = raw
    mu = x.mean(-1, keepdims=True)
    var = ((x - mu) ** 2).mean(-1, keepdims=True)
    nx = (x - mu) / jnp.sqrt(var + LN_EPS) * ln_g + ln_b
    half = D // 2
    x_shift, x_pass = nx[..., :half], nx[..., half:]
    x_shift = jnp.concatenate([jnp.zeros((B, 1, half)), x_shift[:, :-1, :]], axis=1)
    nx2 = jnp.concatenate([x_shift, x_pass], axis=-1)
    hv = nx2 @ w_h + b_h
    hv = hv * jax.nn.sigmoid(hv)
    v, gate = hv[..., :H], hv[..., H:]
    qk = nx2 @ w_qk + b_qk
    qk = qk * jax.nn.sigmoid(qk)
    q = qk * gamma[0] + beta[0]
    k = qk * gamma[1] + beta[1]
    inv_freq = 1.0 / (10000.0 ** (jnp.arange(0, ROT, 2, dtype=jnp.float32) / ROT))
    t = jnp.arange(N, dtype=jnp.float32)
    freqs = t[:, None] * inv_freq[None, :]
    cos = jnp.repeat(jnp.cos(freqs), 2, axis=-1)
    sin = jnp.repeat(jnp.sin(freqs), 2, axis=-1)

    def rope_i(z):
        zr = z[..., :ROT]
        zp = zr.reshape(*zr.shape[:-1], ROT // 2, 2)
        rh = jnp.stack([-zp[..., 1], zp[..., 0]], axis=-1).reshape(*zr.shape)
        return jnp.concatenate([zr * cos + rh * sin, z[..., ROT:]], axis=-1)

    q, k = rope_i(q), rope_i(k)
    sim = jnp.einsum('bid,bjd->bij', q, k)
    sim = sim + t5_relative_position_bias(N, rel_emb, REL_SCALE)
    attn = jnp.maximum(sim / N, 0.0) ** 2
    attn = attn * mask2
    out = jnp.einsum('bij,bjd->bid', attn, v)
    out = out * gate
    out = out @ w_o + b_o
    return out + x


if __name__ == "__main__":
    key = jax.random.PRNGKey(0)
    kx, kp = jax.random.split(key)
    x = jax.random.normal(kx, (B, N, D), dtype=jnp.float32)

    raw = make_raw_params(kp)
    # TODO(synk): my_mask2's source tensor is undefined in the reference module;
    # using a deterministic all-ones (seq, seq) mask (broadcast over batch).
    mask2 = jnp.ones((N, N), jnp.float32)

    w_all, tab = prepare_kernel_params(raw, mask2)
    y = gau_pallas(x, w_all, tab)
    jax.block_until_ready(y)

    y_ref = ref_gau(x, raw, mask2)
    assert y.shape == (B, N, D)
    assert np.allclose(np.asarray(y), np.asarray(y_ref), atol=1e-2, rtol=1e-2), \
        f"max abs err = {float(jnp.max(jnp.abs(y - y_ref)))}"
    print("KERNEL_OK")
</pallas_src>

<mosaic_0001>
module attributes {stable_mosaic.version = 11 : i64} {
  func.func @gau_kernel(%arg0: memref<16x32xf32, #tpu.memory_space<vmem>>, %arg1: memref<96x192xbf16, #tpu.memory_space<vmem>>, %arg2: memref<88x128xf32, #tpu.memory_space<vmem>>, %arg3: memref<16x32xf32, #tpu.memory_space<vmem>>) attributes {dimension_semantics = [], scalar_prefetch = 0 : i64, scratch_operands = 0 : i64, tpu.core_type = #tpu.core_type<tc>} {
    %c0 = arith.constant 0 : index
    %c0_0 = arith.constant 0 : index
    %0 = vector.load %arg0[%c0, %c0_0] : memref<16x32xf32, #tpu.memory_space<vmem>>, vector<16x32xf32>
    %c0_1 = arith.constant 0 : index
    %c0_2 = arith.constant 0 : index
    %1 = vector.load %arg2[%c0_1, %c0_2] : memref<88x128xf32, #tpu.memory_space<vmem>>, vector<1x32xf32>
    %c1 = arith.constant 1 : index
    %c0_3 = arith.constant 0 : index
    %2 = vector.load %arg2[%c1, %c0_3] : memref<88x128xf32, #tpu.memory_space<vmem>>, vector<1x32xf32>
    %c2 = arith.constant 2 : index
    %c0_4 = arith.constant 0 : index
    %3 = vector.load %arg2[%c2, %c0_4] : memref<88x128xf32, #tpu.memory_space<vmem>>, vector<1x32xf32>
    %c3 = arith.constant 3 : index
    %c0_5 = arith.constant 0 : index
    %4 = vector.load %arg2[%c3, %c0_5] : memref<88x128xf32, #tpu.memory_space<vmem>>, vector<1x128xf32>
    %c4 = arith.constant 4 : index
    %c0_6 = arith.constant 0 : index
    %5 = vector.load %arg2[%c4, %c0_6] : memref<88x128xf32, #tpu.memory_space<vmem>>, vector<1x64xf32>
    %c8 = arith.constant 8 : index
    %c0_7 = arith.constant 0 : index
    %6 = vector.load %arg2[%c8, %c0_7] : memref<88x128xf32, #tpu.memory_space<vmem>>, vector<16x128xf32>
    %c24 = arith.constant 24 : index
    %c0_8 = arith.constant 0 : index
    %7 = vector.load %arg2[%c24, %c0_8] : memref<88x128xf32, #tpu.memory_space<vmem>>, vector<16x128xf32>
    %c40 = arith.constant 40 : index
    %c0_9 = arith.constant 0 : index
    %8 = vector.load %arg2[%c40, %c0_9] : memref<88x128xf32, #tpu.memory_space<vmem>>, vector<16x128xf32>
    %c56 = arith.constant 56 : index
    %c0_10 = arith.constant 0 : index
    %9 = vector.load %arg2[%c56, %c0_10] : memref<88x128xf32, #tpu.memory_space<vmem>>, vector<16x128xf32>
    %c72 = arith.constant 72 : index
    %c0_11 = arith.constant 0 : index
    %10 = vector.load %arg2[%c72, %c0_11] : memref<88x128xf32, #tpu.memory_space<vmem>>, vector<16x16xf32>
    %cst = arith.constant dense<0.000000e+00> : vector<16xf32>
    %11 = vector.multi_reduction <add>, %0, %cst [1] : vector<16x32xf32> to vector<16xf32>
    %12 = vector.shape_cast %11 : vector<16xf32> to vector<16x1xf32>
    %cst_12 = arith.constant 3.200000e+01 : f32
    %13 = vector.broadcast %cst_12 : f32 to vector<16x1xf32>
    %14 = arith.divf %12, %13 : vector<16x1xf32>
    %15 = vector.broadcast %14 : vector<16x1xf32> to vector<16x32xf32>
    %16 = arith.subf %0, %15 : vector<16x32xf32>
    %17 = arith.mulf %16, %16 : vector<16x32xf32>
    %cst_13 = arith.constant dense<0.000000e+00> : vector<16xf32>
    %18 = vector.multi_reduction <add>, %17, %cst_13 [1] : vector<16x32xf32> to vector<16xf32>
    %19 = vector.shape_cast %18 : vector<16xf32> to vector<16x1xf32>
    %cst_14 = arith.constant 3.200000e+01 : f32
    %20 = vector.broadcast %cst_14 : f32 to vector<16x1xf32>
    %21 = arith.divf %19, %20 : vector<16x1xf32>
    %cst_15 = arith.constant 9.99999974E-6 : f32
    %22 = vector.broadcast %cst_15 : f32 to vector<16x1xf32>
    %23 = arith.addf %21, %22 : vector<16x1xf32>
    %24 = math.rsqrt %23 : vector<16x1xf32>
    %25 = vector.broadcast %24 : vector<16x1xf32> to vector<16x32xf32>
    %26 = arith.mulf %16, %25 : vector<16x32xf32>
    %27 = vector.broadcast %1 : vector<1x32xf32> to vector<16x32xf32>
    %28 = arith.mulf %26, %27 : vector<16x32xf32>
    %29 = vector.broadcast %2 : vector<1x32xf32> to vector<16x32xf32>
    %30 = arith.addf %28, %29 : vector<16x32xf32>
    %31 = tpu.iota {dimensions = array<i32: 0>} : vector<16x32xi32>
    %32 = tpu.iota {dimensions = array<i32: 1>} : vector<16x32xi32>
    %c1_i32 = arith.constant 1 : i32
    %33 = tpu.dynamic_rotate %30 by %c1_i32 dim 0 : vector<16x32xf32>, i32 -> vector<16x32xf32>
    %c8_i32 = arith.constant 8 : i32
    %c0_i32 = arith.constant 0 : i32
    %34 = arith.cmpi eq, %c8_i32, %c0_i32 : i32
    %c1_i32_16 = arith.constant 1 : i32
    %35 = arith.select %34, %c1_i32_16, %c8_i32 : i32
    %36 = vector.broadcast %35 : i32 to vector<16x32xi32>
    %37 = arith.remsi %31, %36 : vector<16x32xi32>
    %c0_i32_17 = arith.constant 0 : i32
    %38 = vector.broadcast %c0_i32_17 : i32 to vector<16x32xi32>
    %39 = arith.cmpi ne, %37, %38 : vector<16x32xi32>
    %c0_i32_18 = arith.constant 0 : i32
    %40 = vector.broadcast %c0_i32_18 : i32 to vector<16x32xi32>
    %41 = arith.cmpi slt, %37, %40 : vector<16x32xi32>
    %c0_i32_19 = arith.constant 0 : i32
    %42 = arith.cmpi slt, %35, %c0_i32_19 : i32
    %43 = vector.broadcast %42 : i1 to vector<16x32xi1>
    %44 = vector.broadcast %43 : vector<16x32xi1> to vector<16x32xi1>
    %45 = arith.xori %41, %44 : vector<16x32xi1>
    %46 = arith.andi %45, %39 : vector<16x32xi1>
    %47 = vector.broadcast %35 : i32 to vector<16x32xi32>
    %48 = arith.addi %37, %47 : vector<16x32xi32>
    %49 = arith.select %46, %48, %37 : vector<16x32xi1>, vector<16x32xi32>
    %c0_i32_20 = arith.constant 0 : i32
    %50 = vector.broadcast %c0_i32_20 : i32 to vector<16x32xi32>
    %51 = arith.cmpi eq, %49, %50 : vector<16x32xi32>
    %cst_21 = arith.constant 0.000000e+00 : f32
    %52 = vector.broadcast %cst_21 : f32 to vector<16x32xf32>
    %53 = arith.select %51, %52, %33 : vector<16x32xi1>, vector<16x32xf32>
    %c16_i32 = arith.constant 16 : i32
    %54 = vector.broadcast %c16_i32 : i32 to vector<16x32xi32>
    %55 = arith.cmpi slt, %32, %54 : vector<16x32xi32>
    %56 = arith.select %55, %53, %30 : vector<16x32xi1>, vector<16x32xf32>
    %57 = arith.truncf %56 : vector<16x32xf32> to vector<16x32xbf16>
    %c0_22 = arith.constant 0 : index
    %c0_23 = arith.constant 0 : index
    %58 = vector.load %arg1[%c0_22, %c0_23] : memref<96x192xbf16, #tpu.memory_space<vmem>>, vector<32x192xbf16>
    %cst_24 = arith.constant dense<0.000000e+00> : vector<16x192xf32>
    %59 = tpu.matmul %57, %58, %cst_24 {dimension_numbers = #tpu.dot_dimension_numbers<[1], [0], [0], [1], [0, 0, 1, 1], [], []>} : vector<16x32xbf16>, vector<32x192xbf16>, vector<16x192xf32> -> vector<16x192xf32>
    %60 = vector.extract_strided_slice %59 {offsets = [0, 0], sizes = [16, 128], strides = [1, 1]} : vector<16x192xf32> to vector<16x128xf32>
    %61 = vector.broadcast %4 : vector<1x128xf32> to vector<16x128xf32>
    %62 = arith.addf %60, %61 : vector<16x128xf32>
    %63 = arith.negf %62 : vector<16x128xf32>
    %64 = math.exp %63 : vector<16x128xf32>
    %cst_25 = arith.constant 1.000000e+00 : f32
    %65 = vector.broadcast %cst_25 : f32 to vector<16x128xf32>
    %66 = arith.addf %65, %64 : vector<16x128xf32>
    %67 = arith.divf %65, %66 : vector<16x128xf32>
    %68 = arith.mulf %62, %67 : vector<16x128xf32>
    %69 = vector.extract_strided_slice %68 {offsets = [0, 0], sizes = [16, 64], strides = [1, 1]} : vector<16x128xf32> to vector<16x64xf32>
    %70 = vector.extract_strided_slice %68 {offsets = [0, 64], sizes = [16, 64], strides = [1, 1]} : vector<16x128xf32> to vector<16x64xf32>
    %71 = vector.extract_strided_slice %59 {offsets = [0, 128], sizes = [16, 64], strides = [1, 1]} : vector<16x192xf32> to vector<16x64xf32>
    %72 = vector.broadcast %5 : vector<1x64xf32> to vector<16x64xf32>
    %73 = arith.addf %71, %72 : vector<16x64xf32>
    %74 = arith.negf %73 : vector<16x64xf32>
    %75 = math.exp %74 : vector<16x64xf32>
    %cst_26 = arith.constant 1.000000e+00 : f32
    %76 = vector.broadcast %cst_26 : f32 to vector<16x64xf32>
    %77 = arith.addf %76, %75 : vector<16x64xf32>
    %78 = arith.divf %76, %77 : vector<16x64xf32>
    %79 = arith.mulf %73, %78 : vector<16x64xf32>
    %c48_i32 = arith.constant 48 : i32
    %80 = tpu.dynamic_rotate %79 by %c48_i32 dim 1 : vector<16x64xf32>, i32 -> vector<16x64xf32>
    %c16_i32_27 = arith.constant 16 : i32
    %81 = tpu.dynamic_rotate %79 by %c16_i32_27 dim 1 : vector<16x64xf32>, i32 -> vector<16x64xf32>
    %82 = vector.extract_strided_slice %6 {offsets = [0, 0], sizes = [16, 64], strides = [1, 1]} : vector<16x128xf32> to vector<16x64xf32>
    %83 = arith.mulf %79, %82 : vector<16x64xf32>
    %84 = vector.extract_strided_slice %7 {offsets = [0, 0], sizes = [16, 64], strides = [1, 1]} : vector<16x128xf32> to vector<16x64xf32>
    %85 = arith.mulf %80, %84 : vector<16x64xf32>
    %86 = arith.addf %83, %85 : vector<16x64xf32>
    %87 = vector.extract_strided_slice %8 {offsets = [0, 0], sizes = [16, 64], strides = [1, 1]} : vector<16x128xf32> to vector<16x64xf32>
    %88 = arith.mulf %81, %87 : vector<16x64xf32>
    %89 = arith.addf %86, %88 : vector<16x64xf32>
    %90 = vector.extract_strided_slice %9 {offsets = [0, 0], sizes = [16, 64], strides = [1, 1]} : vector<16x128xf32> to vector<16x64xf32>
    %91 = arith.addf %89, %90 : vector<16x64xf32>
    %92 = vector.extract_strided_slice %6 {offsets = [0, 64], sizes = [16, 64], strides = [1, 1]} : vector<16x128xf32> to vector<16x64xf32>
    %93 = arith.mulf %79, %92 : vector<16x64xf32>
    %94 = vector.extract_strided_slice %7 {offsets = [0, 64], sizes = [16, 64], strides = [1, 1]} : vector<16x128xf32> to vector<16x64xf32>
    %95 = arith.mulf %80, %94 : vector<16x64xf32>
    %96 = arith.addf %93, %95 : vector<16x64xf32>
    %97 = vector.extract_strided_slice %8 {offsets = [0, 64], sizes = [16, 64], strides = [1, 1]} : vector<16x128xf32> to vector<16x64xf32>
    %98 = arith.mulf %81, %97 : vector<16x64xf32>
    %99 = arith.addf %96, %98 : vector<16x64xf32>
    %100 = vector.extract_strided_slice %9 {offsets = [0, 64], sizes = [16, 64], strides = [1, 1]} : vector<16x128xf32> to vector<16x64xf32>
    %101 = arith.addf %99, %100 : vector<16x64xf32>
    %102 = arith.truncf %91 : vector<16x64xf32> to vector<16x64xbf16>
    %103 = arith.truncf %101 : vector<16x64xf32> to vector<16x64xbf16>
    %cst_28 = arith.constant dense<0.000000e+00> : vector<16x16xf32>
    %104 = tpu.matmul %102, %103, %cst_28 {dimension_numbers = #tpu.dot_dimension_numbers<[1], [1], [0], [0], [0, 0, 1, 0], [], []>} : vector<16x64xbf16>, vector<16x64xbf16>, vector<16x16xf32> -> vector<16x16xf32>
    %105 = arith.addf %104, %10 : vector<16x16xf32>
    %cst_29 = arith.constant 0.000000e+00 : f32
    %106 = vector.broadcast %cst_29 : f32 to vector<16x16xf32>
    %107 = arith.maximumf %105, %106 : vector<16x16xf32>
    %108 = arith.mulf %107, %107 : vector<16x16xf32>
    %109 = arith.truncf %108 : vector<16x16xf32> to vector<16x16xbf16>
    %110 = arith.truncf %69 : vector<16x64xf32> to vector<16x64xbf16>
    %cst_30 = arith.constant dense<0.000000e+00> : vector<16x64xf32>
    %111 = tpu.matmul %109, %110, %cst_30 {dimension_numbers = #tpu.dot_dimension_numbers<[1], [0], [0], [1], [0, 0, 1, 1], [], []>} : vector<16x16xbf16>, vector<16x64xbf16>, vector<16x64xf32> -> vector<16x64xf32>
    %112 = arith.mulf %111, %70 : vector<16x64xf32>
    %113 = arith.truncf %112 : vector<16x64xf32> to vector<16x64xbf16>
    %c32 = arith.constant 32 : index
    %c0_31 = arith.constant 0 : index
    %114 = vector.load %arg1[%c32, %c0_31] : memref<96x192xbf16, #tpu.memory_space<vmem>>, vector<64x32xbf16>
    %cst_32 = arith.constant dense<0.000000e+00> : vector<16x32xf32>
    %115 = tpu.matmul %113, %114, %cst_32 {dimension_numbers = #tpu.dot_dimension_numbers<[1], [0], [0], [1], [0, 0, 1, 1], [], []>} : vector<16x64xbf16>, vector<64x32xbf16>, vector<16x32xf32> -> vector<16x32xf32>
    %116 = vector.broadcast %3 : vector<1x32xf32> to vector<16x32xf32>
    %117 = arith.addf %115, %116 : vector<16x32xf32>
    %118 = arith.addf %117, %0 : vector<16x32xf32>
    %c0_33 = arith.constant 0 : index
    %c0_34 = arith.constant 0 : index
    %119 = vector.load %arg3[%c0_33, %c0_34] : memref<16x32xf32, #tpu.memory_space<vmem>>, vector<16x32xf32>
    tpu.vector_store %arg3[%c0_33, %c0_34], %118 {strides = array<i32>} : memref<16x32xf32, #tpu.memory_space<vmem>>, vector<16x32xf32>,
    return
  }
}

</mosaic_0001>

<bundles_post_ra>
// kernel: tpu_custom_call.1
= control target key start
LH: loop header
LB: loop body
LE: loop exit
PB: predicated region body
PF: predicated region fallthrough
CT: control target
= control target key end

     0   :  { %8 = vsyncpa [#allocation3], 0  ;;  %s903_s0 = inlined_call_operand.hbm [shape: f32[16,32], index: 0, kind: input, shape index: {}]   ;;  %s904_s1 = inlined_call_operand.hbm [shape: bf16[96,192], index: 1, kind: input, shape index: {}]   ;;  %s905_s2 = inlined_call_operand.hbm [shape: f32[88,128], index: 2, kind: input, shape index: {}]   ;;  %s906_s3 = inlined_call_operand.hbm [shape: f32[16,32], index: 3, kind: output, shape index: {}]  }
   0x1   :  { %9 = vsyncpa [#allocation6], 0 }
   0x2   :  { %10 = vsyncpa [#allocation4], 0  ;;  %s28_s14 = sshll.u32 %s904_s1, 4  ;;  %s756_s15 = smov [#allocation5]   ;;  %s29_s14 = int_to_ptr.hbm [resolvable:$true] %s28_s14 }
   0x3   :  { %s30_s16 = sshll.u32 %s756_s15, 4  ;;  %s15_s19 = sshll.u32 %s903_s0, 4  ;;  %s31_s16 = int_to_ptr.vmem [resolvable:$true] %s30_s16  ;;  %s16_s19 = int_to_ptr.hbm [resolvable:$true] %s15_s19 }
   0x4   :  { %s757_s20 = smov 128   ;;  %s758_s21 = smov 8  }
   0x5   :  { %36 = dma.hbm_to_vmem [thread:$0]  %s29_s14, 1536, %s31_s16, [#allocation6], %s757_s20, %s757_s20, %s758_s21  }
   0x6   :  { %s759_s22 = smov [#allocation2]   ;;  %s41_s1 = sshll.u32 %s905_s2, 4  ;;  %s42_s1 = int_to_ptr.hbm [resolvable:$true] %s41_s1 }
   0x7   :  { %s17_s23 = sshll.u32 %s759_s22, 4  ;;  %s760_s0 = smov [#allocation7]   ;;  %s18_s23 = int_to_ptr.vmem [resolvable:$true] %s17_s23 }
   0x8   :  { %23 = dma.hbm_to_vmem [thread:$0]  %s16_s19, 256, %s18_s23, [#allocation3], %s757_s20, %s757_s20, %s758_s21  }
   0x9   :  { %s43_s26 = sshll.u32 %s760_s0, 4  ;;  %s44_s26 = int_to_ptr.vmem [resolvable:$true] %s43_s26 }
   0xa   :  { %49 = dma.hbm_to_vmem [thread:$0]  %s42_s1, 1408, %s44_s26, [#allocation6], %s757_s20, %s757_s20, %s758_s21  }
   0xb   :  { %750 = dma.done.wait [#allocation3], 256  }
   0xc   :  { %751 = vsyncadd [#allocation3], 4294967040 }
   0xd   :  { %752 = dma.done.wait [#allocation6], 2944  }
   0xe   :  { %753 = vsyncadd [#allocation6], 4294964352  ;;  %vm80_vm0 = vcmask 261120   ;;  %v806_v0 = vld [vmem:[#allocation2] sm:$0xff]  ;;  %v810_v2 = vld [vmem:[#allocation2 + $0x8] sm:$0xff]  ;;  %v761_v4 = vmov 32.0   ;;  %v138_v47 = vlaneseq }
   0xf   :  { %v81_v1 = vsel %vm80_vm0, %v806_v0, 0.0  ;;  %v84_v3 = vsel %vm80_vm0, %v810_v2, 0.0  ;;  %632 = vrcp.f32 %v761_v4  ;;  %v576_v21 = vld [vmem:[#allocation5 + $0x10] sm:$0xf]  ;;  %v610_v22 = vld [vmem:[#allocation5 + $0x14] sm:$0xf0] }
  0x10   :  { %82 = vadd.xlane.f32.xlu0 %v81_v1  ;;  %v609_v23 = vld [vmem:[#allocation5 + $0x14] sm:$0xf]  ;;  %v577_v25 = vor.u32 %v610_v22, %v576_v21  ;;  %v578_v26 = vld [vmem:[#allocation5 + $0x18] sm:$0xf0]  ;;  %v568_v27 = vld [vmem:[#allocation5] sm:$0xf] }
  0x11   :  { %v608_v28 = vld [vmem:[#allocation5 + $0x4] sm:$0xf0]  ;;  %v581_v30 = vor.u32 %v609_v23, %v578_v26  ;;  %v607_v31 = vld [vmem:[#allocation5 + $0x4] sm:$0xf]  ;;  %v570_v32 = vld [vmem:[#allocation5 + $0x8] sm:$0xf0] }
  0x12   :  { %213 = vmatpush.bf16.msra.mxu0 %v577_v25  ;;  %v569_v33 = vor.u32 %v608_v28, %v568_v27  ;;  %v573_v35 = vor.u32 %v607_v31, %v570_v32  ;;  %v627_v52 = vld [vmem:[#allocation7] ss:$0 sm:$0xff]  ;;  %v139_v53 = vshrl.u32 %v138_v47, 7  ;;  %v628_v57 = vld [vmem:[#allocation7 + $0x1] ss:$0 sm:$0xff]  ;;  %s762_s2 = smov 64  }
  0x13   :  { %227 = vmatpush.bf16.msra.mxu1 %v581_v30  ;;  %s763_s27 = smov 80   ;;  %s764_s28 = smov 112  }
  0x14   :  { %v140_v58 = vadd.s32 8, %v139_v53  ;;  %v152_v63 = vand.u32 7, %v139_v53  ;;  %vm145_vm8 = vcmp.lt.s32.totalorder %v139_v53, 1  ;;  %s765_s29 = smov 16   ;;  %s766_s30 = smov 48  }
  0x15   :  { %v633_v5 = vpop.eup %632  ;;  %s767_s4 = smov [#allocation8]   ;;  %s552_s8 = sshll.u32 %s906_s3, 4  ;;  %s553_s8 = int_to_ptr.hbm [resolvable:$true] %s552_s8 }
  0x16   :  { %v88_v6 = vmul.f32 32.0, %v633_v5  ;;  %vm92_vm1 = vweird.f32 %v633_v5  ;;  %214 = vmatpush.bf16.msra.mxu0 %v569_v33  ;;  %v159_v1 = vand.u32 7, %v140_v58  ;;  %vm172_vm9 = vcmp.eq.s32.totalorder %v152_v63, 0  ;;  %s550_s5 = sshll.u32 %s767_s4, 4  ;;  %s551_s5 = int_to_ptr.vmem [resolvable:$true] %s550_s5 }
  0x17   :  { %228 = vmatpush.bf16.msra.mxu1 %v573_v35 }
  0x18   :  { %85 = vadd.xlane.f32.xlu0 %v84_v3  ;;  %v89_v7 = vsub.f32 1.0, %v88_v6  ;;  %v142_v3 = vand.u32 127, %v138_v47  ;;  %vm173_vm10 = vcmp.eq.s32.totalorder %v159_v1, 0 }
  0x1a   :  { %v90_v8 = vmul.f32 %v633_v5, %v89_v7  ;;  %vm176_vm11 = vcmp.lt.s32.totalorder %v142_v3, 16 }
  0x1c   :  { %v91_v9 = vadd.f32 %v633_v5, %v90_v8 }
  0x1e   :  { %v93_v10 = vsel %vm92_vm1, %v633_v5, %v91_v9 }
  0x83   :  { %v83_v11 = vpop.xlane.xlu0 %82 }
  0x84   :  { %v94_v12 = vmul.f32 %v93_v10, %v83_v11 }
  0x86   :  { %v96_v13 = vsub.f32 %v806_v0, %v94_v12 }
  0x88   :  { %v98_v14 = vmul.f32 %v96_v13, %v96_v13 }
  0x8a   :  { %v100_v15 = vsel %vm80_vm0, %v98_v14, 0.0  ;;  %v629_v14 = vld [vmem:[#allocation7 + $0x3] ss:$0 sm:$0xff] }
  0x8b   :  { %101 = vadd.xlane.f32.xlu1 %v100_v15  ;;  %v86_v16 = vpop.xlane.xlu0 %85  ;;  %v630_v15 = vld [vmem:[#allocation7 + $0x4] ss:$0 sm:$0xff] }
  0x8c   :  { %v95_v17 = vmul.f32 %v93_v10, %v86_v16 }
  0x8e   :  { %v97_v18 = vsub.f32 %v810_v2, %v95_v17 }
  0x90   :  { %v99_v19 = vmul.f32 %v97_v18, %v97_v18 }
  0x92   :  { %v103_v20 = vsel %vm80_vm0, %v99_v19, 0.0 }
  0x93   :  { %104 = vadd.xlane.f32.xlu1 %v103_v20 }
  0xfe   :  { %v102_v24 = vpop.xlane.xlu1 %101 }
  0xff   :  { %v106_v29 = vmul.f32 %v102_v24, %v93_v10 }
 0x101   :  { %v108_v34 = vadd.f32 1e-05, %v106_v29 }
 0x103   :  { %634 = vrsqrt.f32 %v108_v34  ;;  %vm116_vm3 = vweird.f32 %v108_v34 }
 0x106   :  { %v105_v36 = vpop.xlane.xlu1 %104 }
 0x107   :  { %v107_v37 = vmul.f32 %v105_v36, %v93_v10 }
 0x109   :  { %v635_v38 = vpop.eup %634  ;;  %v109_v39 = vadd.f32 1e-05, %v107_v37 }
 0x10a   :  { %v111_v40 = vmul.f32 %v635_v38, %v108_v34  ;;  %vm117_vm2 = vweird.f32 %v635_v38 }
 0x10b   :  { %636 = vrsqrt.f32 %v109_v39  ;;  %vm118_vm4 = vmor %vm116_vm3, %vm117_vm2  ;;  %vm126_vm6 = vweird.f32 %v109_v39 }
 0x10c   :  { %v112_v41 = vmul.f32 %v635_v38, %v111_v40 }
 0x10e   :  { %v113_v42 = vmul.f32 0.5, %v112_v41 }
 0x110   :  { %v114_v43 = vsub.f32 1.5, %v113_v42 }
 0x111   :  { %v637_v44 = vpop.eup %636 }
 0x112   :  { %v115_v45 = vmul.f32 %v635_v38, %v114_v43  ;;  %v121_v46 = vmul.f32 %v637_v44, %v109_v39  ;;  %vm127_vm5 = vweird.f32 %v637_v44 }
 0x113   :  { %vm128_vm7 = vmor %vm126_vm6, %vm127_vm5 }
 0x114   :  { %v119_v48 = vsel %vm118_vm4, %v635_v38, %v115_v45  ;;  %v122_v49 = vmul.f32 %v637_v44, %v121_v46 }
 0x115   :  { %v130_v51 = vmul.f32 %v119_v48, %v96_v13 }
 0x116   :  { %v123_v50 = vmul.f32 0.5, %v122_v49 }
 0x117   :  { %v133_v56 = vmul.f32 %v627_v52, %v130_v51 }
 0x118   :  { %v124_v54 = vsub.f32 1.5, %v123_v50 }
 0x119   :  { %v136_v62 = vadd.f32 %v628_v57, %v133_v56 }
 0x11a   :  { %v125_v55 = vmul.f32 %v637_v44, %v124_v54 }
 0x11b   :  { %v143_v5 = vrot.slane %v136_v62, 7 }
 0x11c   :  { %v129_v59 = vsel %vm128_vm7, %v637_v44, %v125_v55 }
 0x11d   :  { %v131_v60 = vmul.f32 %v129_v59, %v97_v18 }
 0x11f   :  { %v134_v61 = vmul.f32 %v627_v52, %v131_v60 }
 0x121   :  { %v137_v4 = vadd.f32 %v628_v57, %v134_v61 }
 0x123   :  { %v144_v6 = vrot.slane %v137_v4, 7 }
 0x125   :  { %v146_v7 = vsel %vm145_vm8, %v143_v5, %v144_v6  ;;  %v147_v8 = vsel %vm145_vm8, %v144_v6, %v143_v5 }
 0x126   :  { %v174_v9 = vsel %vm172_vm9, 0.0, %v147_v8  ;;  %v175_v10 = vsel %vm173_vm10, 0.0, %v146_v7 }
 0x127   :  { %v177_v11 = vsel %vm176_vm11, %v174_v9, %v136_v62  ;;  %v178_v12 = vsel %vm176_vm11, %v175_v10, %v137_v4 }
 0x128   :  { %v179_v13 = vpack.c.bf16 %v178_v12, %v177_v11 }
 0x12a   :  { %582 = vmatmul.msk.bf16.vlgmr.msra.gmra.mxu0 %vm80_vm0, %v179_v13  ;;  %583 = vmatmul.msk.bf16.vlgmr.msra.gmra.mxu1 %vm80_vm0, %v179_v13 }
 0x1a7   :  { %v216_v16 = vpop.f32.mrf.mxu0  ;;  %v230_v17 = vpop.f32.mrf.mxu1 }
 0x1a8   :  { %v820_v18 = vadd.f32 %v629_v14, %v216_v16  ;;  %v279_v19 = vadd.f32 %v630_v15, %v230_v17 }
 0x1aa   :  { %v584_v20 = vmul.f32 -1.442695, %v820_v18  ;;  %v586_v21 = vmul.f32 -1.442695, %v279_v19 }
 0x1ac   :  { %638 = vpow2.f32 %v584_v20 }
 0x1ad   :  { %640 = vpow2.f32 %v586_v21  ;;  %v72_v21 = vld [vmem:[#allocation7 + $0x18] sm:$0xff] }
 0x1af   :  { %v218_v22 = vpop.f32.mrf.mxu0  ;;  %v232_v23 = vpop.f32.mrf.mxu1 }
 0x1b0   :  { %v823_v24 = vadd.f32 %v629_v14, %v218_v22  ;;  %v825_v25 = vadd.f32 %v630_v15, %v232_v23  ;;  %v74_v22 = vld [vmem:[#allocation7 + $0x28] sm:$0xff] }
 0x1b2   :  { %v639_v26 = vpop.eup %638  ;;  %v585_v27 = vmul.f32 -1.442695, %v823_v24  ;;  %v587_v30 = vmul.f32 -1.442695, %v825_v25 }
 0x1b3   :  { %v641_v28 = vpop.eup %640  ;;  %v244_v29 = vadd.f32 1.0, %v639_v26 }
 0x1b4   :  { %v287_v31 = vadd.f32 1.0, %v641_v28  ;;  %642 = vpow2.f32 %v585_v27  ;;  %v71_v28 = vld [vmem:[#allocation7 + $0x10] sm:$0xff] }
 0x1b5   :  { %644 = vrcp.f32 %v244_v29  ;;  %v255_v52 = vand.u32 2147483647, %v244_v29  ;;  %v257_v53 = vand.u32 2147483648, %v244_v29  ;;  %vm251_vm2 = vweird.f32 %v244_v29 }
 0x1b6   :  { %646 = vrcp.f32 %v287_v31  ;;  %v300_v42 = vand.u32 2147483648, %v287_v31  ;;  %v298_v44 = vand.u32 2147483647, %v287_v31  ;;  %vm294_vm13 = vweird.f32 %v287_v31 }
 0x1b7   :  { %648 = vpow2.f32 %v587_v30  ;;  %vm256_vm5 = vcmp.eq.f32.partialorder %v255_v52, 8.507059e+37  ;;  %v258_v3 = vor.u32 1.1754944e-38, %v257_v53  ;;  %v864_v30 = vld [vmem:[#allocation7 + $0x40] sm:$0xff] }
 0x1b8   :  { %v301_v48 = vor.u32 1.1754944e-38, %v300_v42  ;;  %vm299_vm1 = vcmp.eq.f32.partialorder %v298_v44, 8.507059e+37 }
 0x1ba   :  { %v643_v32 = vpop.eup %642 }
 0x1bb   :  { %v645_v33 = vpop.eup %644  ;;  %v245_v34 = vadd.f32 1.0, %v643_v32 }
 0x1bc   :  { %v647_v35 = vpop.eup %646  ;;  %v247_v36 = vmul.f32 %v645_v33, %v244_v29  ;;  %vm252_vm15 = vweird.f32 %v645_v33  ;;  %v70_v29 = vld [vmem:[#allocation7 + $0x8] sm:$0xff] }
 0x1bd   :  { %v649_v37 = vpop.eup %648  ;;  %v290_v38 = vmul.f32 %v647_v35, %v287_v31  ;;  %650 = vrcp.f32 %v245_v34  ;;  %vm295_vm12 = vweird.f32 %v647_v35  ;;  %vm831_vm3 = vmor %vm251_vm2, %vm252_vm15  ;;  %v272_v60 = vand.u32 2147483648, %v245_v34  ;;  %v76_v31 = vld [vmem:[#allocation7 + $0x38] sm:$0xff] }
 0x1be   :  { %v288_v39 = vadd.f32 1.0, %v649_v37  ;;  %v248_v40 = vsub.f32 1.0, %v247_v36  ;;  %vm296_vm14 = vmor %vm294_vm13, %vm295_vm12  ;;  %v270_v63 = vand.u32 2147483647, %v245_v34  ;;  %vm266_vm6 = vweird.f32 %v245_v34 }
 0x1bf   :  { %v291_v41 = vsub.f32 1.0, %v290_v38  ;;  %v273_v9 = vor.u32 1.1754944e-38, %v272_v60  ;;  %vm321_vm13 = vcmask 1048064   ;;  %vm463_vm15 = vcmask 130048  }
 0x1c0   :  { %652 = vrcp.f32 %v288_v39  ;;  %v249_v45 = vmul.f32 %v645_v33, %v248_v40  ;;  %v313_v4 = vand.u32 2147483647, %v288_v39  ;;  %v315_v5 = vand.u32 2147483648, %v288_v39 }
 0x1c1   :  { %v292_v43 = vmul.f32 %v647_v35, %v291_v41  ;;  %vm271_vm9 = vcmp.eq.f32.partialorder %v270_v63, 8.507059e+37  ;;  %vm309_vm10 = vweird.f32 %v288_v39 }
 0x1c2   :  { %v250_v49 = vadd.f32 %v645_v33, %v249_v45  ;;  %v316_v13 = vor.u32 1.1754944e-38, %v315_v5  ;;  %vm314_vm12 = vcmp.eq.f32.partialorder %v313_v4, 8.507059e+37 }
 0x1c3   :  { %v651_v46 = vpop.eup %650  ;;  %v293_v47 = vadd.f32 %v647_v35, %v292_v43 }
 0x1c4   :  { %v262_v50 = vmul.f32 %v651_v46, %v245_v34  ;;  %v254_v61 = vsel %vm831_vm3, %v645_v33, %v250_v49  ;;  %vm267_vm4 = vweird.f32 %v651_v46 }
 0x1c5   :  { %v297_v51 = vsel %vm296_vm14, %v647_v35, %v293_v47  ;;  %v259_v8 = vsel %vm256_vm5, %v258_v3, %v254_v61  ;;  %vm268_vm8 = vmor %vm266_vm6, %vm267_vm4  ;;  %vm436_vm14 = vcmask 523264  }
 0x1c6   :  { %v653_v54 = vpop.eup %652  ;;  %v302_v55 = vsel %vm299_vm1, %v301_v48, %v297_v51  ;;  %v263_v56 = vsub.f32 1.0, %v262_v50  ;;  %v840_v14 = vmul.f32 %v259_v8, %v820_v18  ;;  %v73_v18 = vld [vmem:[#allocation7 + $0x20] sm:$0xff] }
 0x1c7   :  { %v829_v57 = vmul.f32 %v302_v55, %v279_v19  ;;  %v305_v58 = vmul.f32 %v653_v54, %v288_v39  ;;  %vm310_vm7 = vweird.f32 %v653_v54 }
 0x1c8   :  { %v264_v62 = vmul.f32 %v651_v46, %v263_v56  ;;  %vm311_vm11 = vmor %vm309_vm10, %vm310_vm7 }
 0x1c9   :  { %v306_v1 = vsub.f32 1.0, %v305_v58  ;;  %322 = vrot.lane.b32.xlu2 %v829_v57, %s762_s2 }
 0x1ca   :  { %v265_v6 = vadd.f32 %v651_v46, %v264_v62 }
 0x1cb   :  { %v307_v7 = vmul.f32 %v653_v54, %v306_v1 }
 0x1cc   :  { %v269_v10 = vsel %vm268_vm8, %v651_v46, %v265_v6  ;;  %v334_v6 = vmul.f32 %v829_v57, %v70_v29 }
 0x1cd   :  { %v308_v11 = vadd.f32 %v653_v54, %v307_v7  ;;  %v274_v12 = vsel %vm271_vm9, %v273_v9, %v269_v10 }
 0x1ce   :  { %v843_v15 = vmul.f32 %v274_v12, %v823_v24 }
 0x1cf   :  { %v312_v16 = vsel %vm311_vm11, %v653_v54, %v308_v11 }
 0x1d0   :  { %v317_v17 = vsel %vm314_vm12, %v316_v13, %v312_v16  ;;  %v462_v19 = vpack.c.bf16 %v843_v15, %v840_v14 }
 0x1d1   :  { %v848_v20 = vmul.f32 %v317_v17, %v825_v25  ;;  %v75_v25 = vld [vmem:[#allocation7 + $0x30] sm:$0xff] }
 0x1d2   :  { %474 = vmatpush.bf16.msra.mxu3 %v462_v19 }
 0x1d3   :  { %325 = vrot.lane.b32.xlu2 %v848_v20, %s762_s2  ;;  %v335_v11 = vmul.f32 %v848_v20, %v71_v28 }
 0x1db   :  { %388 = vrot.lane.b32.xlu2 %v72_v21, %s763_s27 }
 0x1e3   :  { %390 = vrot.lane.b32.xlu2 %v73_v18, %s763_s27 }
 0x1eb   :  { %406 = vrot.lane.b32.xlu2 %v74_v22, %s764_s28 }
 0x1f3   :  { %338 = vrot.lane.b32.xlu2 %v72_v21, %s765_s29 }
 0x1fb   :  { %360 = vrot.lane.b32.xlu2 %v75_v25, %s766_s30 }
 0x223   :  { %v323_v23 = vpop.permute.xlu2 %322 }
 0x224   :  { %v324_v24 = vsel %vm321_vm13, %v323_v23, %v829_v57  ;;  %v614_v23 = vld [vmem:[#allocation5 + $0x54] sm:$0xf0] }
 0x225   :  { %328 = vrot.lane.b32.xlu0 %v324_v24, %s762_s2 }
 0x22d   :  { %v326_v26 = vpop.permute.xlu2 %325  ;;  %408 = vrot.lane.b32.xlu0 %v75_v25, %s764_s28  ;;  %v78_v25 = vld [vmem:[#allocation7 + $0x48] sm:$0xff] }
 0x22e   :  { %v327_v27 = vsel %vm321_vm13, %v326_v26, %v848_v20 }
 0x22f   :  { %330 = vrot.lane.b32.xlu1 %v327_v27, %s762_s2  ;;  %v79_v27 = vld [vmem:[#allocation7 + $0x50] sm:$0xff] }
 0x235   :  { %358 = vrot.lane.b32.xlu0 %v74_v22, %s766_s30  ;;  %v389_v32 = vpop.permute.xlu2 %388  ;;  %v604_v22 = vld [vmem:[#allocation5 + $0x50] sm:$0xf] }
 0x236   :  { %v605_v24 = vor.u32 %v614_v23, %v604_v22 }
 0x237   :  { %340 = vrot.lane.b32.xlu1 %v73_v18, %s765_s29 }
 0x238   :  { %532 = vmatpush.bf16.msrb.mxu3 %v605_v24 }
 0x23d   :  { %382 = vrot.lane.b32.xlu0 %v71_v28, %s762_s2  ;;  %v391_v33 = vpop.permute.xlu2 %390 }
 0x23f   :  { %380 = vrot.lane.b32.xlu1 %v70_v29, %s762_s2 }
 0x245   :  { %428 = vrot.lane.b32.xlu0 %v864_v30, %s762_s2  ;;  %v407_v34 = vpop.permute.xlu2 %406 }
 0x247   :  { %426 = vrot.lane.b32.xlu1 %v76_v31, %s762_s2 }
 0x24d   :  { %v339_v39 = vpop.permute.xlu2 %338 }
 0x255   :  { %v361_v50 = vpop.permute.xlu2 %360 }
 0x297   :  { %v329_v35 = vpop.permute.xlu0 %328 }
 0x298   :  { %v332_v36 = vsel %vm321_vm13, %v329_v35, %v829_v57 }
 0x299   :  { %v394_v37 = vmul.f32 %v389_v32, %v332_v36  ;;  %v412_v38 = vmul.f32 %v407_v34, %v332_v36  ;;  %v344_v41 = vmul.f32 %v339_v39, %v332_v36  ;;  %v612_v39 = vld [vmem:[#allocation5 + $0x34] sm:$0xf0] }
 0x29b   :  { %398 = vrot.lane.b32.xlu2 %v394_v37, %s764_s28  ;;  %416 = vrot.lane.b32.xlu0 %v412_v38, %s763_s27  ;;  %v596_v38 = vld [vmem:[#allocation5 + $0x30] sm:$0xf] }
 0x29f   :  { %v409_v40 = vpop.permute.xlu0 %408 }
 0x2a1   :  { %v331_v42 = vpop.permute.xlu1 %330 }
 0x2a2   :  { %v333_v43 = vsel %vm321_vm13, %v331_v42, %v848_v20  ;;  %v611_v42 = vld [vmem:[#allocation5 + $0x24] sm:$0xf0] }
 0x2a3   :  { %v395_v44 = vmul.f32 %v391_v33, %v333_v43  ;;  %348 = vrot.lane.b32.xlu2 %v344_v41, %s764_s28  ;;  %v413_v48 = vmul.f32 %v409_v40, %v333_v43  ;;  %v365_v51 = vmul.f32 %v361_v50, %v333_v43  ;;  %v597_v40 = vor.u32 %v612_v39, %v596_v38  ;;  %v592_v41 = vld [vmem:[#allocation5 + $0x20] sm:$0xf] }
 0x2a5   :  { %400 = vrot.lane.b32.xlu1 %v395_v44, %s764_s28 }
 0x2a7   :  { %v359_v45 = vpop.permute.xlu0 %358 }
 0x2a8   :  { %v364_v46 = vmul.f32 %v359_v45, %v332_v36  ;;  %v613_v36 = vld [vmem:[#allocation5 + $0x44] sm:$0xf0] }
 0x2a9   :  { %v341_v47 = vpop.permute.xlu1 %340 }
 0x2aa   :  { %v345_v49 = vmul.f32 %v341_v47, %v333_v43  ;;  %368 = vrot.lane.b32.xlu0 %v364_v46, %s763_s27  ;;  %v593_v43 = vor.u32 %v611_v42, %v592_v41 }
 0x2ab   :  { %418 = vrot.lane.b32.xlu2 %v413_v48, %s763_s27 }
 0x2ad   :  { %350 = vrot.lane.b32.xlu1 %v345_v49, %s764_s28 }
 0x2af   :  { %v383_v52 = vpop.permute.xlu0 %382 }
 0x2b0   :  { %v387_v61 = vmul.f32 %v383_v52, %v848_v20 }
 0x2b1   :  { %v381_v54 = vpop.permute.xlu1 %380 }
 0x2b2   :  { %485 = vrot.lane.b32.xlu0 %v843_v15, %s762_s2  ;;  %v386_v59 = vmul.f32 %v381_v54, %v829_v57 }
 0x2b3   :  { %370 = vrot.lane.b32.xlu2 %v365_v51, %s763_s27  ;;  %v631_v51 = vld [vmem:[#allocation7 + $0x2] ss:$0 sm:$0xff] }
 0x2b5   :  { %483 = vrot.lane.b32.xlu1 %v840_v14, %s762_s2 }
 0x2b7   :  { %v429_v55 = vpop.permute.xlu0 %428 }
 0x2b9   :  { %v427_v58 = vpop.permute.xlu1 %426 }
 0x2f5   :  { %v399_v53 = vpop.permute.xlu2 %398 }
 0x2f6   :  { %v404_v62 = vadd.f32 %v399_v53, %v386_v59 }
 0x2fd   :  { %v349_v56 = vpop.permute.xlu2 %348 }
 0x2fe   :  { %v354_v10 = vadd.f32 %v349_v56, %v334_v6 }
 0x305   :  { %v419_v63 = vpop.permute.xlu2 %418 }
 0x30d   :  { %v417_v60 = vpop.permute.xlu0 %416  ;;  %v371_v17 = vpop.permute.xlu2 %370 }
 0x30e   :  { %v422_v3 = vadd.f32 %v417_v60, %v404_v62 }
 0x310   :  { %v432_v7 = vadd.f32 %v427_v58, %v422_v3 }
 0x317   :  { %v401_v1 = vpop.permute.xlu1 %400 }
 0x318   :  { %v405_v4 = vadd.f32 %v401_v1, %v387_v61 }
 0x31a   :  { %v423_v5 = vadd.f32 %v419_v63, %v405_v4 }
 0x31c   :  { %v433_v8 = vadd.f32 %v429_v55, %v423_v5  ;;  %v369_v9 = vpop.permute.xlu0 %368 }
 0x31d   :  { %v374_v14 = vadd.f32 %v369_v9, %v354_v10 }
 0x31e   :  { %v435_v12 = vpack.c.bf16 %v433_v8, %v432_v7 }
 0x31f   :  { %v351_v13 = vpop.permute.xlu1 %350  ;;  %v376_v21 = vadd.f32 %v374_v14, %v76_v31 }
 0x320   :  { %v355_v15 = vadd.f32 %v351_v13, %v335_v11  ;;  %v441_v16 = vsel %vm436_vm14, %v435_v12, 0 }
 0x321   :  { %450 = vmatpush.bf16.xpose.msra.mxu2 %v441_v16 }
 0x322   :  { %v375_v19 = vadd.f32 %v371_v17, %v355_v15 }
 0x324   :  { %v377_v18 = vadd.f32 %v375_v19, %v864_v30  ;;  %v600_v30 = vld [vmem:[#allocation5 + $0x40] sm:$0xf]  ;;  %v486_v45 = vpop.permute.xlu0 %485 }
 0x325   :  { %v601_v37 = vor.u32 %v613_v36, %v600_v30 }
 0x326   :  { %v434_v57 = vpack.c.bf16 %v377_v18, %v376_v21 }
 0x327   :  { %533 = vmatpush.bf16.msrb.mxu3 %v601_v37  ;;  %v484_v46 = vpop.permute.xlu1 %483 }
 0x328   :  { %588 = vmatmul.msk.bf16.vlgmr.msra.gmra.mxu2 %vm436_vm14, %v434_v57 }
 0x32b   :  { %534 = vmatpush.bf16.msrb.mxu3 %v597_v40 }
 0x32f   :  { %535 = vmatpush.bf16.msrb.mxu3 %v593_v43 }
 0x3ab   :  { %v452_v20 = vpop.f32.mrf.mxu2 }
 0x3ac   :  { %v453_v26 = vadd.f32 %v452_v20, %v78_v25 }
 0x3ae   :  { %v457_v29 = vmax.f32 %v453_v26, 0.0 }
 0x3b0   :  { %v459_v34 = vmul.f32 %v457_v29, %v457_v29 }
 0x3b3   :  { %v454_v28 = vpop.f32.mrf.mxu2 }
 0x3b4   :  { %v455_v32 = vadd.f32 %v454_v28, %v79_v27 }
 0x3b6   :  { %v458_v33 = vmax.f32 %v455_v32, 0.0 }
 0x3b8   :  { %v460_v35 = vmul.f32 %v458_v33, %v458_v33 }
 0x3ba   :  { %v461_v31 = vpack.c.bf16 %v460_v35, %v459_v34 }
 0x3bc   :  { %589 = vmatmul.msk.bf16.vlgmr.msra.gmra.mxu3 %vm463_vm15, %v461_v31 }
 0x43f   :  { %v476_v44 = vpop.f32.mrf.mxu3 }
 0x440   :  { %v489_v48 = vmul.f32 %v484_v46, %v476_v44 }
 0x447   :  { %v478_v47 = vpop.f32.mrf.mxu3 }
 0x448   :  { %v490_v49 = vmul.f32 %v486_v45, %v478_v47 }
 0x44a   :  { %v491_v50 = vpack.c.bf16 %v490_v49, %v489_v48 }
 0x44c   :  { %606 = vmatmul.msk.bf16.vlgmr.msrb.gmra.mxu3 %vm436_vm14, %v491_v50 }
 0x4cf   :  { %v537_v52 = vpop.f32.mrf.mxu3 }
 0x4d0   :  { %v538_v53 = vadd.f32 %v631_v51, %v537_v52 }
 0x4d2   :  { %v542_v54 = vadd.f32 %v538_v53, %v806_v0 }
 0x4d4   :  { %544 = vst.msk [vmem:[#allocation8] sm:$0xff] %vm80_vm0, %v542_v54 }
 0x4d7   :  { %v539_v55 = vpop.f32.mrf.mxu3 }
 0x4d8   :  { %v540_v56 = vadd.f32 %v631_v51, %v539_v55 }
 0x4da   :  { %v543_v58 = vadd.f32 %v540_v56, %v810_v2 }
 0x4dc   :  { %545 = vst.msk [vmem:[#allocation8 + $0x8] sm:$0xff] %vm80_vm0, %v543_v58 }
 0x4dd   :  { %558 = dma.vmem_to_hbm [thread:$0]  %s551_s5, 256, %s553_s8, [#allocation4], %s757_s20, %s757_s20, %s758_s21  }
 0x4de   :  { %754 = dma.done.wait [#allocation4], 256  }
 0x4df   :  { %755 = vsyncadd [#allocation4], 4294967040 }
 0x4e0   :  { %563 = vsyncpa [#allocation3], 1 }
 0x4e1   :  { %564 = vsyncpa [#allocation6], 1 }
 0x4e2   :  { %565 = vsyncpa [#allocation4], 1 }

</bundles_post_ra>
